<compile_context>
chip_gen: v7x
topology: tpu7x:2x2x1
jax: 0.10.0
libtpu: 0.0.40
codegen_flags: <defaults>
</compile_context>

<pallas_src>
import functools

import jax
import jax.numpy as jnp
from jax import lax
from jax.experimental import pallas as pl
from jax.experimental.pallas import tpu as pltpu


def _round_up(n, m):
    return ((n + m - 1) // m) * m


def _cdiv(a, b):
    return -(-a // b)


def _vmem_capacity_bytes():
    try:
        cap = getattr(pltpu.get_tpu_info(), "vmem_capacity_bytes", None)
        if cap:
            return int(cap)
    except Exception:
        pass
    return 64 * 1024 * 1024  # conservative fallback (v7x per-TensorCore VMEM)


def _select_tiling(B, HWp, K, itemsize, tile_budget):
    """Pick (TB, TK): batches packed per grid step and the K reduction tile."""

    def pq_bytes(tb, tk):
        # P tile + Q tile, double-buffered by the default depth-2 pipeline.
        return 2 * 2 * tb * HWp * tk * itemsize

    if K <= 128 or pq_bytes(1, K) <= tile_budget:
        # Typical path: whole K extent in one reduction step; pack as many
        # batches as fit.  Keep >= 2 batch-grid steps when B >= 2 so the
        # "parallel" axis feeds both TensorCores.
        tb = max(1, tile_budget // max(1, pq_bytes(1, K)))
        if B >= 2:
            tb = min(tb, _cdiv(B, 2))
        return int(min(tb, B)), int(K)

    # Large K: tile the reduction.  TK must be a multiple of 128 (lane dim of
    # the P tile); the ragged tail (K % TK) is masked in-kernel, not padded.
    tk = (tile_budget // max(1, pq_bytes(1, 1))) // 128 * 128
    tk = int(max(128, min(tk, (K // 128) * 128)))
    return 1, tk


def _downcor_s_kernel(x_ref, p_ref, q_ref, o_ref, *scratch,
                      inv_hw, k_steps, k_total, tk):
    # x_ref: (TB, 1, HWp)   p_ref: (TB, HWp, TK)   q_ref: (TB, TK, HWp)
    # o_ref: (TB, 1, HWp)   scratch: optional f32 accumulator (low-prec output)
    k = pl.program_id(1)
    inv = jnp.float32(inv_hw)

    x = x_ref[...]
    p = p_ref[...]
    q = q_ref[...]
    if x.dtype != p.dtype:                       # mixed-precision inputs only
        ct = jnp.promote_types(x.dtype, p.dtype)
        x, p = x.astype(ct), p.astype(ct)

    # out1[b, 0, k] = tanh( (sum_m x[b, 0, m] * P[b, m, k]) / HW )
    out1 = jnp.tanh(
        jnp.einsum("bcm,bmk->bck", x, p, preferred_element_type=jnp.float32)
        * inv)                                                  # (TB, 1, TK) f32

    if k_total % tk != 0:
        # Ragged tail K tile: lanes / rows at global k >= k_total hold
        # unspecified out-of-bounds data; zero them on both operands.
        k0 = k * tk
        lane_k = lax.broadcasted_iota(jnp.int32, out1.shape, 2) + k0
        out1 = jnp.where(lane_k < k_total, out1, 0.0)
        sub_k = lax.broadcasted_iota(jnp.int32, q.shape, 1) + k0
        q = jnp.where(sub_k < k_total, q, jnp.zeros_like(q))

    contrib = jnp.einsum("bck,bkm->bcm", out1.astype(q.dtype), q,
                         preferred_element_type=jnp.float32)    # (TB, 1, HWp) f32

    if k_steps == 1:
        o_ref[...] = jnp.tanh(contrib * inv).astype(o_ref.dtype)
        return

    # K-tiled reduction: accumulate in f32.  For f32 outputs the resident
    # output block itself is the accumulator (no extra scratch buffer).
    acc_ref = scratch[0] if scratch else o_ref

    @pl.when(k == 0)
    def _():
        acc_ref[...] = jnp.zeros_like(acc_ref)

    acc_ref[...] += contrib

    @pl.when(k == k_steps - 1)
    def _():
        o_ref[...] = jnp.tanh(acc_ref[...] * inv).astype(o_ref.dtype)


def downcor_s(x, P, Q, *, tb=None, tk=None):
    """x: (B, 1, H, W); P reshapable to (B, H*W, K); Q to (B, K, H*W) -> (B, H, W)."""
    B, C, H, W = x.shape
    if C != 1:
        raise ValueError("downCor_s's final view(B, H, W) requires C == 1")
    HW = H * W

    x_flat = x.reshape(B, C, HW)
    P_flat = P.reshape(B, HW, -1)
    K = P_flat.shape[-1]
    if Q.size != B * K * HW:
        raise ValueError("Q is not reshapable to (B, K, H*W)")
    Q_flat = Q.reshape(B, K, HW)
    out_dtype = jnp.result_type(x.dtype, P.dtype, Q.dtype)

    # Lane density: pad HW up to a multiple of 128 only when necessary (typical
    # HW = 256 needs no padding).  Zero rows/cols are semantics-preserving; the
    # 1/HW scale always uses the original HW.
    HWp = _round_up(HW, 128)
    if HWp != HW:
        d = HWp - HW
        x_flat = jnp.pad(x_flat, ((0, 0), (0, 0), (0, d)))
        P_flat = jnp.pad(P_flat, ((0, 0), (0, d), (0, 0)))
        Q_flat = jnp.pad(Q_flat, ((0, 0), (0, 0), (0, d)))

    p_item = jnp.dtype(P_flat.dtype).itemsize
    q_item = jnp.dtype(Q_flat.dtype).itemsize
    x_item = jnp.dtype(x_flat.dtype).itemsize
    o_item = jnp.dtype(out_dtype).itemsize

    cap = _vmem_capacity_bytes()
    tile_budget = int(cap * 0.65)          # ~42 MiB on v7x, ~83 MiB on v5e/v6e
    tb_auto, tk_auto = _select_tiling(B, HWp, K, max(p_item, q_item), tile_budget)
    tb = int(tb) if tb is not None else tb_auto
    tk = int(tk) if tk is not None else tk_auto
    tb = max(1, min(tb, B))
    tk = max(1, min(tk, K))
    if tk < K:
        tk = max(128, (tk // 128) * 128)   # lane-dim constraint of the P tile
        if tk >= K:
            tk = K
    k_steps = _cdiv(K, tk)
    b_steps = _cdiv(B, tb)

    use_scratch = (k_steps > 1) and (out_dtype != jnp.float32)
    scratch_shapes = ([pltpu.VMEM((tb, 1, HWp), jnp.float32)]
                      if use_scratch else [])

    per_step_bytes = (2 * tb * HWp * tk * (p_item + q_item)
                      + 2 * tb * HWp * (x_item + o_item)
                      + (4 * tb * HWp if use_scratch else 0))
    vmem_limit = int(min(cap, max(int(cap * 0.75), per_step_bytes + (2 << 20))))

    kernel = functools.partial(_downcor_s_kernel, inv_hw=1.0 / float(HW),
                               k_steps=k_steps, k_total=K, tk=tk)

    cost = pl.CostEstimate(
        flops=int(4 * B * HW * K),
        transcendentals=int(B * (K + HW)),
        bytes_accessed=int(B * HW * K * (p_item + q_item)
                           + B * HW * (x_item + o_item)),
    )

    out = pl.pallas_call(
        kernel,
        out_shape=jax.ShapeDtypeStruct((B, 1, HWp), out_dtype),
        grid=(b_steps, k_steps),
        in_specs=[
            pl.BlockSpec((tb, 1, HWp), lambda b, k: (b, 0, 0)),    # x (resident over k)
            pl.BlockSpec((tb, HWp, tk), lambda b, k: (b, 0, k)),   # P, natural layout
            pl.BlockSpec((tb, tk, HWp), lambda b, k: (b, k, 0)),   # Q, natural layout
        ],
        out_specs=pl.BlockSpec((tb, 1, HWp), lambda b, k: (b, 0, 0)),
        scratch_shapes=scratch_shapes,
        compiler_params=pltpu.CompilerParams(
            dimension_semantics=("parallel", "arbitrary"),
            vmem_limit_bytes=vmem_limit),
        cost_estimate=cost,
    )(x_flat, P_flat, Q_flat)

    return out[:, 0, :HW].reshape(B, H, W)


def downcor_s_ref(x, P, Q):
    """Pure-JAX reference mirroring the PyTorch forward (f32 compute)."""
    B, C, H, W = x.shape
    HW = H * W
    x_f = x.reshape(B, C, HW).astype(jnp.float32)
    P_f = P.reshape(B, HW, -1).astype(jnp.float32)
    Q_f = Q.reshape(B, P_f.shape[-1], HW).astype(jnp.float32)
    out1 = jnp.tanh(jnp.einsum("bcm,bmk->bck", x_f, P_f) / HW)
    out = jnp.tanh(jnp.einsum("bck,bkm->bcm", out1, Q_f) / HW)
    return out.reshape(B, H, W)


if __name__ == "__main__":
    key = jax.random.PRNGKey(0)

    # Case 1: the module's typical tiny shape -> single K step, both TensorCores
    # fed (batch grid axis has 2 steps), no scratch.
    B, C, H, W, K = 2, 1, 16, 16, 32
    HW = H * W
    kx, kp, kq, key = jax.random.split(key, 4)
    x = jax.random.normal(kx, (B, C, H, W), dtype=jnp.float32)
    P = jax.random.normal(kp, (B, HW, K), dtype=jnp.float32)
    Q = jax.random.normal(kq, (B, K, HW), dtype=jnp.float32)
    out = jax.block_until_ready(downcor_s(x, P, Q))
    ref = downcor_s_ref(x, P, Q)
    assert out.shape == (B, H, W)
    assert jnp.allclose(out, ref, atol=1e-4, rtol=1e-3), "mismatch (case 1)"

    # Case 2: K > 128, not a multiple of the tile -> K-tiled reduction grid,
    # in-kernel ragged-tail mask, f32 accumulation in the resident output block.
    K2 = 320
    kx2, kp2, kq2, key = jax.random.split(key, 4)
    x2 = jax.random.normal(kx2, (B, C, H, W), dtype=jnp.float32)
    P2 = jax.random.normal(kp2, (B, HW, K2), dtype=jnp.float32)
    Q2 = jax.random.normal(kq2, (B, K2, HW), dtype=jnp.float32)
    out2 = jax.block_until_ready(downcor_s(x2, P2, Q2, tk=128))
    ref2 = downcor_s_ref(x2, P2, Q2)
    assert jnp.allclose(out2, ref2, atol=1e-4, rtol=1e-3), "mismatch (case 2)"

    # Case 3: bf16 inputs with a K-tiled reduction -> dedicated f32 scratch
    # accumulator path, bf16 operands straight into the MXU (f32 accumulate).
    xb, Pb, Qb = [a.astype(jnp.bfloat16) for a in (x2, P2, Q2)]
    out3 = jax.block_until_ready(downcor_s(xb, Pb, Qb, tk=128))
    ref3 = downcor_s_ref(xb, Pb, Qb)
    assert out3.dtype == jnp.bfloat16
    assert jnp.allclose(out3.astype(jnp.float32), ref3, atol=1e-3, rtol=2e-2), \
        "mismatch (case 3)"

    # Case 4: odd batch + HW not a multiple of 128 -> batch packing (TB > 1)
    # with a ragged batch tail, and host-side lane padding of HW.
    B4, H4, W4, K4 = 5, 14, 14, 16
    HW4 = H4 * W4
    kx4, kp4, kq4, key = jax.random.split(key, 4)
    x4 = jax.random.normal(kx4, (B4, 1, H4, W4), dtype=jnp.float32)
    P4 = jax.random.normal(kp4, (B4, HW4, K4), dtype=jnp.float32)
    Q4 = jax.random.normal(kq4, (B4, K4, HW4), dtype=jnp.float32)
    out4 = jax.block_until_ready(downcor_s(x4, P4, Q4))
    ref4 = downcor_s_ref(x4, P4, Q4)
    assert out4.shape == (B4, H4, W4)
    assert jnp.allclose(out4, ref4, atol=1e-4, rtol=1e-3), "mismatch (case 4)"

    print("KERNEL_OK")
</pallas_src>

<mosaic_0001>
module attributes {stable_mosaic.version = 11 : i64} {
  func.func @_downcor_s_kernel(%arg0: i32, %arg1: i32, %arg2: memref<1x1x256xf32, #tpu.memory_space<vmem>>, %arg3: memref<1x256x32xf32, #tpu.memory_space<vmem>>, %arg4: memref<1x32x256xf32, #tpu.memory_space<vmem>>, %arg5: memref<1x1x256xf32, #tpu.memory_space<vmem>>) attributes {dimension_semantics = [#tpu.dimension_semantics<parallel>, #tpu.dimension_semantics<arbitrary>], iteration_bounds = array<i64: 2, 1>, scalar_prefetch = 0 : i64, scratch_operands = 0 : i64, tpu.core_type = #tpu.core_type<tc>, window_params = [{transform_indices = @transform_0, window_bounds = array<i64: 1, 1, 256>}, {transform_indices = @transform_1, window_bounds = array<i64: 1, 256, 32>}, {transform_indices = @transform_2, window_bounds = array<i64: 1, 32, 256>}, {transform_indices = @transform_3, window_bounds = array<i64: 1, 1, 256>}]} {
    %c0 = arith.constant 0 : index
    %c0_0 = arith.constant 0 : index
    %c0_1 = arith.constant 0 : index
    %0 = vector.load %arg2[%c0, %c0_0, %c0_1] : memref<1x1x256xf32, #tpu.memory_space<vmem>>, vector<1x1x256xf32>
    %c0_2 = arith.constant 0 : index
    %c0_3 = arith.constant 0 : index
    %c0_4 = arith.constant 0 : index
    %1 = vector.load %arg3[%c0_2, %c0_3, %c0_4] : memref<1x256x32xf32, #tpu.memory_space<vmem>>, vector<1x256x32xf32>
    %c0_5 = arith.constant 0 : index
    %c0_6 = arith.constant 0 : index
    %c0_7 = arith.constant 0 : index
    %2 = vector.load %arg4[%c0_5, %c0_6, %c0_7] : memref<1x32x256xf32, #tpu.memory_space<vmem>>, vector<1x32x256xf32>
    "tpu.trace_start"() <{level = 10 : i32, message = "bcm,bmk->bck"}> : () -> ()
    %cst = arith.constant dense<0.000000e+00> : vector<1x1x32xf32>
    %3 = tpu.matmul %0, %1, %cst {dimension_numbers = #tpu.dot_dimension_numbers<[2], [1], [1], [2], [0, 0, 0, 1, 1, 2], [0], [0]>} : vector<1x1x256xf32>, vector<1x256x32xf32>, vector<1x1x32xf32> -> vector<1x1x32xf32>
    "tpu.trace_stop"() : () -> ()
    %cst_8 = arith.constant 3.906250e-03 : f32
    %4 = vector.broadcast %cst_8 : f32 to vector<1x1x32xf32>
    %5 = arith.mulf %3, %4 : vector<1x1x32xf32>
    %6 = math.tanh %5 : vector<1x1x32xf32>
    "tpu.trace_start"() <{level = 10 : i32, message = "bck,bkm->bcm"}> : () -> ()
    %cst_9 = arith.constant dense<0.000000e+00> : vector<1x1x256xf32>
    %7 = tpu.matmul %6, %2, %cst_9 {dimension_numbers = #tpu.dot_dimension_numbers<[2], [1], [1], [2], [0, 0, 0, 1, 1, 2], [0], [0]>} : vector<1x1x32xf32>, vector<1x32x256xf32>, vector<1x1x256xf32> -> vector<1x1x256xf32>
    "tpu.trace_stop"() : () -> ()
    %cst_10 = arith.constant 3.906250e-03 : f32
    %8 = vector.broadcast %cst_10 : f32 to vector<1x1x256xf32>
    %9 = arith.mulf %7, %8 : vector<1x1x256xf32>
    %10 = math.tanh %9 : vector<1x1x256xf32>
    %c0_11 = arith.constant 0 : index
    %c0_12 = arith.constant 0 : index
    %c0_13 = arith.constant 0 : index
    %11 = vector.load %arg5[%c0_11, %c0_12, %c0_13] : memref<1x1x256xf32, #tpu.memory_space<vmem>>, vector<1x1x256xf32>
    tpu.vector_store %arg5[%c0_11, %c0_12, %c0_13], %10 {strides = array<i32>} : memref<1x1x256xf32, #tpu.memory_space<vmem>>, vector<1x1x256xf32>,
    return
  }
  func.func @transform_0(%arg0: i32, %arg1: i32) -> (i32, i32, i32) {
    %c0_i32 = arith.constant 0 : i32
    %c0_i32_0 = arith.constant 0 : i32
    %c0_i32_1 = arith.constant 0 : i32
    return %arg0, %c0_i32, %c0_i32_0 : i32, i32, i32
  }
  func.func @transform_1(%arg0: i32, %arg1: i32) -> (i32, i32, i32) {
    %c0_i32 = arith.constant 0 : i32
    %c0_i32_0 = arith.constant 0 : i32
    return %arg0, %c0_i32, %arg1 : i32, i32, i32
  }
  func.func @transform_2(%arg0: i32, %arg1: i32) -> (i32, i32, i32) {
    %c0_i32 = arith.constant 0 : i32
    %c0_i32_0 = arith.constant 0 : i32
    return %arg0, %arg1, %c0_i32 : i32, i32, i32
  }
  func.func @transform_3(%arg0: i32, %arg1: i32) -> (i32, i32, i32) {
    %c0_i32 = arith.constant 0 : i32
    %c0_i32_0 = arith.constant 0 : i32
    %c0_i32_1 = arith.constant 0 : i32
    return %arg0, %c0_i32, %c0_i32_0 : i32, i32, i32
  }
}

</mosaic_0001>

<bundles_post_ra>
// kernel: tpu_custom_call.1
= control target key start
LH: loop header
LB: loop body
LE: loop exit
PB: predicated region body
PF: predicated region fallthrough
CT: control target
= control target key end

     0   :  { %8 = vsyncpa [#allocation3], 0  ;;  %s1020_s0 = inlined_call_operand.vmem [shape: f32[2,1,256], index: 0, kind: input, shape index: {}]   ;;  %s1021_s1 = inlined_call_operand.vmem [shape: f32[2,256,32], index: 1, kind: input, shape index: {}]   ;;  %s1022_s2 = inlined_call_operand.vmem [shape: f32[2,32,256], index: 2, kind: input, shape index: {}]   ;;  %s1023_s3 = inlined_call_operand.hbm [shape: f32[2,1,256], index: 3, kind: output, shape index: {}]  }
   0x1   :  { %10 = vsyncpa [#allocation3 + $0x1], 0  ;;  %s856_s12 = smov 0   ;;  %s858_s13 = smov 0  }
   0x2   :  { %s860_s14 = smov 0   ;;  %s862_s15 = smov 0  }
   0x3   :  { %s864_s16 = smov 0   ;;  %s866_s17 = smov 0  }
   0x4 LB: > { %s595_s18 = sadd.s32 4294967295, %s831_s17   ;;  %s596_s19 = sadd.s32 4294967294, %s831_s17   ;;  %s831_s17 = sphi %s866_s17, %s16_s17   ;;  %s827_s16 = sphi %s864_s16, %s1030_s16   ;;  %s823_s15 = sphi %s862_s15, %s1029_s15   ;;  %s819_s14 = sphi %s860_s14, %s1028_s14   ;;  %s815_s13 = sphi %s858_s13, %s1027_s13   ;;  %s811_s12 = sphi %s856_s12, %s1026_s12  }
   0x5   : > { %s28_s20 = sadd.s32 1, %s827_s16  ;;  %s117_s21 = sadd.s32 1, %s819_s14 }
   0x6   : > { %p30_p0 = scmp.ge.s32.totalorder %s28_s20, 2  ;;  %p127_p1 = scmp.ne.s32.totalorder %s819_s14, %s815_s13 }
   0x7   : > { %p128_p2 = scmp.eq.s32.totalorder %s595_s18, 1  ;;  %p133_p3 = scmp.ne.s32.totalorder %s815_s13, %s811_s12 }
   0x8   : > { %s1032_s20 = smov (%p30_p0, %s28_s20), 0  ;;  %p134_p5 = scmp.eq.s32.totalorder %s596_s19, 1 }
   0x9   : > { %p896_p4 = por %p128_p2, %p127_p1  ;;  %s114_s23 = ssub.s32 %s827_s16, %s1032_s20 }
   0xa   : > { %p599_p6 = scmp.ge.s32.totalorder %s831_s17, 1  ;;  %p115_p7 = scmp.eq.s32.totalorder %s114_s23, 0 }
   0xb   : > { %p903_p8 = por %p134_p5, %p133_p3  ;;  %p184_p9 = scmp.lt.s32.totalorder %s831_s17, 3 }
   0xc   : > { %s909_s25 = scalar_select %p115_p7, %s819_s14, %s117_s21  }
   0xd   : > { %p185_p10 = pnand %p599_p6, %p184_p9 }
   0xe   : > { %p225_p11 = scmp.lt.s32.totalorder (!%p185_p10), %s823_s15, 1  ;;  %v290_v0 = vlaneseq (!%p185_p10)  ;;  %v833_v62 = vmov (!%p185_p10), 0.0   ;;  %vm372_vm0 = vcmask (!%p185_p10), 261120   ;;  %s222_s18 = sand.u32 (!%p185_p10), 1, %s815_s13  }
   0xf   : > { %188 = sbr.rel (%p185_p10) target bundleno = 535 (0x217), region = 32  ;;  %440 = vmatprep.mubr.f32.mxu1 (!%p185_p10), %v833_v62  ;;  %s600_s19 = sshll.u32 (!%p185_p10), %s222_s18, 1 }
  0x10   : > { %v932_v14 = vshrl.u32 (!%p185_p10), %v290_v0, 7  ;;  %s614_s21 = sshll.u32 (!%p185_p10), %s823_s15, 5  ;;  %s224_s23 = scalar_lea.vmem (!%p185_p10), [#allocation2], %s600_s19  ;;  %vm471_vm1 = vcmp.lt.s32.totalorder (!%p185_p10), %v290_v0, 256 }
  0x11   : > { %s973_s29 = scalar_lea.hbm (!%p185_p10), %s1023_s3, %s614_s21 }
  0x12   : > { %v296_v21 = vsub.s32 (!%p185_p10), 1, %v932_v14  ;;  %v292_v52 = vsub.s32 (!%p185_p10), 0, %v932_v14 }
  0x16   : > { %s913_s26 = scalar_select %p225_p11, %s823_s15, 1 }
  0x17   : > { %s835_s15 = smov [#allocation2]  }
  0x18   : > { %s612_s27 = sshll.u32 %s913_s26, 8  ;;  %s601_s4 = sshll.u32 %s913_s26, 1 }
  0x19   : > { %s919_s30 = scalar_lea.vmem %s1021_s1, %s612_s27  ;;  %s228_s7 = scalar_lea.vmem %s1020_s0, %s601_s4 }
  0x1a   : > { %v265_v1 = vld [vmem:[%s919_s30 + $0x80] sm:$0xff]  ;;  %v266_v2 = vld [vmem:[%s919_s30 + $0x88] sm:$0xff]  ;;  %v267_v6 = vld [vmem:[%s919_s30 + $0x90] sm:$0xff]  ;;  %s613_s8 = sshll.u32 %s913_s26, 6  ;;  %s489_s26 = sshll.u32 %s224_s23, 4  ;;  %s975_s26 = int_to_ptr.vmem [resolvable:$true] %s489_s26 }
  0x1b   : > { %v249_v3 = vld [vmem:[%s919_s30] sm:$0xff]  ;;  %v650_v4 = vpack.c.bf16 %v266_v2, %v265_v1  ;;  %v250_v5 = vld [vmem:[%s919_s30 + $0x8] sm:$0xff]  ;;  %v268_v7 = vld [vmem:[%s919_s30 + $0x98] sm:$0xff]  ;;  %s246_s11 = scalar_lea.vmem %s1022_s2, %s613_s8  ;;  %s753_s4 = scalar_lea.vmem %s975_s26, 32 }
  0x1c   : > { %v652_v8 = vpack.c.bf16 %v250_v5, %v249_v3  ;;  %v654_v9 = vpack.c.bf16 %v268_v7, %v267_v6  ;;  %v251_v10 = vld [vmem:[%s919_s30 + $0x10] sm:$0xff]  ;;  %v252_v11 = vld [vmem:[%s919_s30 + $0x18] sm:$0xff]  ;;  %v269_v12 = vld [vmem:[%s919_s30 + $0xa0] sm:$0xff]  ;;  %p754_p12 = scmp.ne.s32.totalorder %s975_s26, %s753_s4  ;;  %s757_s5 = sshll.u32 %s835_s15, 4  ;;  %s758_s5 = int_to_ptr.vmem [resolvable:$false] %s757_s5 }
  0x1d   : > { %651 = vmatprep.subr.bf16.mxu0 %v650_v4  ;;  %v270_v13 = vld [vmem:[%s919_s30 + $0xa8] sm:$0xff]  ;;  %v656_v15 = vpack.c.bf16 %v252_v11, %v251_v10  ;;  %v253_v17 = vld [vmem:[%s919_s30 + $0x20] sm:$0xff]  ;;  %v271_v19 = vld [vmem:[%s919_s30 + $0xb0] sm:$0xff]  ;;  %s759_s6 = scalar_lea.vmem %s758_s5, 64  ;;  %p760_p1 = scmp.lt.s32.totalorder %s975_s26, %s758_s5 }
  0x1e   : > { %653 = vmatpush3.bf16.msra.mxu0 %v652_v8  ;;  %v658_v16 = vpack.c.bf16 %v270_v13, %v269_v12  ;;  %v254_v18 = vld [vmem:[%s919_s30 + $0x28] sm:$0xff]  ;;  %v272_v20 = vld [vmem:[%s919_s30 + $0xb8] sm:$0xff]  ;;  %v255_v24 = vld [vmem:[%s919_s30 + $0x30] sm:$0xff]  ;;  %p755_p13 = pnand %p754_p12, %p896_p4  ;;  %p761_p2 = scmp.lt.s32.totalorder %s759_s6, %s753_s4 }
  0x1f   : > { %655 = vmatprep.subr.bf16.mxu0 %v654_v9  ;;  %v660_v22 = vpack.c.bf16 %v254_v18, %v253_v17  ;;  %v662_v23 = vpack.c.bf16 %v272_v20, %v271_v19  ;;  %v256_v25 = vld [vmem:[%s919_s30 + $0x38] sm:$0xff]  ;;  %v273_v26 = vld [vmem:[%s919_s30 + $0xc0] sm:$0xff]  ;;  %v274_v27 = vld [vmem:[%s919_s30 + $0xc8] sm:$0xff] }
  0x20   : > { %v248_v28 = vld [vmem:[%s228_s7] sm:$0x3]  ;;  %v664_v30 = vpack.c.bf16 %v256_v25, %v255_v24  ;;  %v666_v31 = vpack.c.bf16 %v274_v27, %v273_v26  ;;  %v258_v33 = vld [vmem:[%s919_s30 + $0x48] sm:$0xff]  ;;  %v275_v34 = vld [vmem:[%s919_s30 + $0xd0] sm:$0xff]  ;;  %p756_p0 = pneg %p755_p13  ;;  %p762_p3 = por %p761_p2, %p760_p1 }
  0x21   : > { %v297_v29 = vrot.slane %v248_v28, %v296_v21  ;;  %v257_v32 = vld [vmem:[%s919_s30 + $0x40] sm:$0xff]  ;;  %v276_v35 = vld [vmem:[%s919_s30 + $0xd8] sm:$0xff]  ;;  %v259_v38 = vld [vmem:[%s919_s30 + $0x50] sm:$0xff]  ;;  %v293_v54 = vrot.slane %v248_v28, %v292_v52 }
  0x22   : > { %657 = vmatpush3.bf16.msra.mxu0 %v656_v15  ;;  %v668_v36 = vpack.c.bf16 %v258_v33, %v257_v32  ;;  %v670_v37 = vpack.c.bf16 %v276_v35, %v275_v34  ;;  %v260_v39 = vld [vmem:[%s919_s30 + $0x58] sm:$0xff]  ;;  %v277_v40 = vld [vmem:[%s919_s30 + $0xe0] sm:$0xff]  ;;  %v278_v41 = vld [vmem:[%s919_s30 + $0xe8] sm:$0xff]  ;;  %v834_v15 = vmov 1966171168   ;;  %p763_p5 = pnand %p762_p3, %p756_p0 }
  0x23   : > { %659 = vmatprep.subr.bf16.mxu0 %v658_v16  ;;  %364 = vmatprep.mubr.f32.mxu0 %v297_v29  ;;  %v672_v42 = vpack.c.bf16 %v260_v39, %v259_v38  ;;  %v674_v43 = vpack.c.bf16 %v278_v41, %v277_v40  ;;  %v261_v44 = vld [vmem:[%s919_s30 + $0x60] sm:$0xff]  ;;  %v262_v45 = vld [vmem:[%s919_s30 + $0x68] sm:$0xff]  ;;  %v279_v46 = vld [vmem:[%s919_s30 + $0xf0] sm:$0xff]  ;;  %v455_v16 = vunpack.c.l.s4 %v834_v15 }
  0x24   : > { %v280_v47 = vld [vmem:[%s919_s30 + $0xf8] sm:$0xff]  ;;  %v676_v48 = vpack.c.bf16 %v262_v45, %v261_v44  ;;  %v263_v50 = vld [vmem:[%s919_s30 + $0x70] sm:$0xff]  ;;  %v282_v55 = vld [vmem:[%s246_s11 + $0x8] sm:$0xff] }
  0x25   : > { %v678_v49 = vpack.c.bf16 %v280_v47, %v279_v46  ;;  %v264_v51 = vld [vmem:[%s919_s30 + $0x78] sm:$0xff]  ;;  %v281_v57 = vld [vmem:[%s246_s11] sm:$0xff]  ;;  %v283_v59 = vld [vmem:[%s246_s11 + $0x10] sm:$0xff]  ;;  %v456_v17 = vunpack.c.0.s8 %v455_v16  ;;  %s475_s30 = scalar_lea.sflag [#allocation3], %s222_s18 }
  0x26   : > { %661 = vmatpush3.bf16.msra.mxu0 %v660_v22  ;;  %v680_v53 = vpack.c.bf16 %v264_v51, %v263_v50  ;;  %v284_v56 = vld [vmem:[%s246_s11 + $0x18] sm:$0xff]  ;;  %v286_v60 = vld [vmem:[%s246_s11 + $0x28] sm:$0xff]  ;;  %v684_v63 = vpack.c.bf16 %v283_v59, %v281_v57  ;;  %v285_v2 = vld [vmem:[%s246_s11 + $0x20] sm:$0xff] }
  0x27   : > { %663 = vmatprep.subr.bf16.mxu0 %v662_v23  ;;  %v682_v58 = vpack.c.bf16 %v284_v56, %v282_v55  ;;  %v288_v61 = vld [vmem:[%s246_s11 + $0x38] sm:$0xff]  ;;  %v287_v3 = vld [vmem:[%s246_s11 + $0x30] sm:$0xff]  ;;  %v459_v19 = vsub.s32 %v456_v17, %v932_v14 }
  0x28   : > { %v686_v1 = vpack.c.bf16 %v288_v61, %v286_v60  ;;  %v688_v4 = vpack.c.bf16 %v287_v3, %v285_v2 }
  0x29   : > { %683 = vmatprep.subr.bf16.mxu1 %v682_v58 }
  0x2a   : > { %665 = vmatpush3.bf16.msra.mxu0 %v664_v30  ;;  %685 = vmatpush1.bf16.msra.mxu1 %v684_v63 }
  0x2b   : > { %667 = vmatprep.subr.bf16.mxu0 %v666_v31  ;;  %687 = vmatprep.subr.bf16.mxu1 %v686_v1 }
  0x2e   : > { %669 = vmatpush3.bf16.msra.mxu0 %v668_v36  ;;  %689 = vmatpush1.bf16.msra.mxu1 %v688_v4 }
  0x2f   : > { %671 = vmatprep.subr.bf16.mxu0 %v670_v37 }
  0x32   : > { %673 = vmatpush3.bf16.msra.mxu0 %v672_v42 }
  0x33   : > { %675 = vmatprep.subr.bf16.mxu0 %v674_v43 }
  0x36   : > { %677 = vmatpush3.bf16.msra.mxu0 %v676_v48 }
  0x37   : > { %679 = vmatprep.subr.bf16.mxu0 %v678_v49 }
  0x3a   : > { %681 = vmatpush3.bf16.msra.mxu0 %v680_v53 }
  0x3d   : > { %365 = vmatmul.mubr.f32.vlgmr.msra.gmra.mrb[0].mxu0 %v293_v54 }
 0x110   : > { %v647_v5 = vpop.f32.mrb[0].mxu0 }
 0x111   : > { %v648_v6 = vpop.f32.mrb[1].mxu0 }
 0x112   : > { %v649_v7 = vadd.f32 %v648_v6, %v647_v5 }
 0x114   : > { %v370_v8 = vmul.f32 0.00390625, %v649_v7 }
 0x116   : > { %747 = vtanh.f32 %v370_v8 }
 0x120   : > { %v748_v9 = vpop.eup %747 }
 0x121   : > { %606 = vmatmul.mubr.msk.f32.vlgmr.msra.gmra.mrb[0].mxu1 %vm372_vm0, %v748_v9 }
 0x1f4   : > { %v442_v10 = vpop.f32.mrb[0].mxu1 }
 0x1f5   : > { %v447_v11 = vmul.f32 0.00390625, %v442_v10  ;;  %v444_v12 = vpop.f32.mrb[1].mxu1 }
 0x1f6   : > { %v448_v13 = vmul.f32 0.00390625, %v444_v12 }
 0x1f7   : > { %749 = vtanh.f32 %v447_v11 }
 0x1f8   : > { %751 = vtanh.f32 %v448_v13 }
 0x201   : > { %v750_v18 = vpop.eup %749 }
 0x202   : > { %v752_v20 = vpop.eup %751 }
 0x203   : > { %v453_v21 = vcombine.low %v750_v18, %v752_v20 }
 0x205   : > { %v460_v22 = vrot.slane %v453_v21, %v459_v19 }
 0x207   : > { %v467_v23 = vrot.slane %v460_v22, %v459_v19 }
 0x209   : > { %473 = vst.msk [vmem:[%s224_s23] sm:$0x3] %vm471_vm1, %v467_v23 }
 0x20a   : > { %766 = shalt.err (!%p763_p5)
}
 0x20b   : > { %s767_s7 = scalar_lea.hbm %s973_s29, 32  ;;  %s771_s10 = scalar_lea.hbm %s1023_s3, 64 }
 0x20c   : > { %p768_p6 = scmp.ne.s32.totalorder %s973_s29, %s767_s7  ;;  %p772_p10 = scmp.lt.u32.totalorder %s973_s29, %s1023_s3 }
 0x20d   : > { %p773_p11 = scmp.lt.u32.totalorder %s771_s10, %s767_s7  ;;  %p775_p13 = scmp.lt.u32.totalorder %s767_s7, %s973_s29 }
 0x20e   : > { %p769_p7 = pnand %p768_p6, %p896_p4 }
 0x20f   : > { %p774_p12 = por %p773_p11, %p772_p10 }
 0x210   : > { %p770_p9 = pneg %p769_p7 }
 0x211   : > { %p776_p0 = por %p775_p13, %p774_p12 }
 0x213   : > { %p777_p1 = pnand %p776_p0, %p770_p9 }
 0x215   : > { %780 = shalt.err (!%p777_p1)
}
 0x216   : > { %690 = dma.vmem_to_hbm [thread:$0]  (%p896_p4), %s975_s26, 32, %s973_s29, %s475_s30  }
 0x217 PF: > { %p696_p2 = scmp.ge.s32.totalorder %s831_s17, 2  ;;  %s501_s19 = sand.u32 1, %s811_s12  }
 0x218   : > { %s502_s21 = scalar_lea.sflag [#allocation3], %s501_s19 }
 0x219   : > { %p693_p3 = pnand %p696_p2, %p903_p8 }
 0x21b   : > { %806 = dma.done.wait (!%p693_p3), %s502_s21, 32  }
 0x21c   : > { %808 = vsyncadd (!%p693_p3), %s502_s21, 4294967264  ;;  %s16_s17 = sadd.s32 1, %s831_s17   ;;  %s1026_s12 = smov %s815_s13 }
 0x21d   : > { %p13_p5 = scmp.ge.s32.totalorder %s16_s17, 4   ;;  %s1027_s13 = smov %s819_s14 }
 0x21e   : > { %s1028_s14 = smov %s909_s25  ;;  %s1029_s15 = smov %s827_s16 }
 0x21f   : > { %s1030_s16 = smov %s1032_s20  ;;  %15 = sbr.rel (!%p13_p5) target bundleno = 4 (0x4), region = 73 }
 0x226   :  { %507 = vsyncpa [#allocation3], 1 }
 0x227   :  { %509 = vsyncpa [#allocation3 + $0x1], 1 }

</bundles_post_ra>
